<compile_context>
chip_gen: v5e
topology: v5e:2x2
jax: 0.10.0
libtpu: 0.0.40
codegen_flags: <defaults>
</compile_context>

<pallas_src>
import functools

import jax
import jax.numpy as jnp
from jax import lax
from jax.experimental import pallas as pl
from jax.experimental.pallas import tpu as pltpu


def _round_up(x, m):
    return (x + m - 1) // m * m


def _qkv_proj_kernel(x_ref, wq_ref, wk_ref, wv_ref, q_ref, k_ref, v_ref, *, scale):
    """One grid step = (batch, seq-tile).

    x_ref: (1, t, d_in); w*: (d_in, d_out); outputs (1, t, d_out).
    The attention scale is folded into Q (done before the softmax max, so the
    numerically-stable softmax operates on already-scaled scores).
    """
    x = x_ref[0]                                                      # (t, d_in)
    q = jnp.dot(x, wq_ref[...], preferred_element_type=jnp.float32) * scale
    k = jnp.dot(x, wk_ref[...], preferred_element_type=jnp.float32)
    v = jnp.dot(x, wv_ref[...], preferred_element_type=jnp.float32)
    q_ref[0] = q.astype(q_ref.dtype)
    k_ref[0] = k.astype(k_ref.dtype)
    v_ref[0] = v.astype(v_ref.dtype)


def _flash_attn_kernel(q_ref, k_ref, v_ref, wo_ref, bo_ref, o_ref,
                       m_ref, l_ref, acc_ref, *, num_heads, head_dim):
    """Grid = (batch, q-tile, kv-tile); kv is the (arbitrary) reduction axis.

    q_ref/k_ref/v_ref: (1, t, d_out) VMEM tiles (scale already folded into Q).
    Scratch: m_ref/l_ref (H, t, 1) f32, acc_ref (H, t, head_dim) f32.
    Output tile o_ref (1, t, d_out) stays resident across the kv axis and is
    written only at finalize.
    """
    qi = pl.program_id(1)
    ki = pl.program_id(2)
    nk = pl.num_programs(2)
    tq = q_ref.shape[1]
    tk = k_ref.shape[1]

    @pl.when(ki == 0)
    def _init():
        m_ref[...] = jnp.full_like(m_ref, -jnp.inf)
        l_ref[...] = jnp.zeros_like(l_ref)
        acc_ref[...] = jnp.zeros_like(acc_ref)

    # Skip kv tiles strictly above the causal diagonal (half the work for
    # causal attention once tiled).
    @pl.when(ki <= qi)
    def _compute():
        q = q_ref[0]                                                  # (tq, d_out)
        k = k_ref[0]                                                  # (tk, d_out)
        v = v_ref[0]                                                  # (tk, d_out)

        # Global causal mask for this (q-tile, kv-tile) pair; only bites on
        # the diagonal tile (all-False for ki < qi).
        row = qi * tq + lax.broadcasted_iota(jnp.int32, (tq, tk), 0)
        col = ki * tk + lax.broadcasted_iota(jnp.int32, (tq, tk), 1)
        causal = col > row

        for h in range(num_heads):          # static unroll; lane-contiguous slices
            lo = h * head_dim
            q_h = q[:, lo:lo + head_dim]                              # (tq, hd)
            k_h = k[:, lo:lo + head_dim]                              # (tk, hd)
            v_h = v[:, lo:lo + head_dim]                              # (tk, hd)

            # Scores: contract last dims directly (no k.T materialization).
            s = lax.dot_general(q_h, k_h, (((1,), (1,)), ((), ())),
                                preferred_element_type=jnp.float32)   # (tq, tk)
            s = jnp.where(causal, -jnp.inf, s)

            m_prev = m_ref[h]                                         # (tq, 1)
            m_new = jnp.maximum(m_prev, jnp.max(s, axis=-1, keepdims=True))
            alpha = jnp.exp(m_prev - m_new)                           # EUP
            p = jnp.exp(s - m_new)                                    # (tq, tk)
            l_ref[h] = alpha * l_ref[h] + jnp.sum(p, axis=-1, keepdims=True)
            acc_ref[h] = alpha * acc_ref[h] + lax.dot_general(
                p.astype(v_h.dtype), v_h, (((1,), (0,)), ((), ())),
                preferred_element_type=jnp.float32)                   # (tq, hd)
            m_ref[h] = m_new

    @pl.when(ki == nk - 1)
    def _finalize():
        wo = wo_ref[...]                                              # (d_out, d_out)
        d_out = wo.shape[1]
        # Output projection decomposed per head (avoids any (H,t,hd)->(t,d_out)
        # relayout): ctx @ W_o == sum_h ctx_h @ W_o[h*hd:(h+1)*hd, :].
        out = jnp.zeros((tq, d_out), jnp.float32)
        for h in range(num_heads):
            lo = h * head_dim
            # Normalization deferred to here (once per q tile), so the divide
            # is off the per-kv-tile hot path; exact reciprocal is negligible.
            inv_l = pl.reciprocal(l_ref[h], approx=False)             # (tq, 1)
            ctx_h = (acc_ref[h] * inv_l).astype(wo.dtype)             # (tq, hd)
            out = out + jnp.dot(ctx_h, wo[lo:lo + head_dim, :],
                                preferred_element_type=jnp.float32)
        out = out + bo_ref[...].astype(jnp.float32)                   # (1, d_out) bcast
        o_ref[0] = out.astype(o_ref.dtype)


def multi_head_attention(x, wq, wk, wv, wo, bo, *, num_heads,
                         block_t=128, vmem_limit_bytes=None):
    """x: (B, T, d_in); weights stored (in, out); bo: (d_out,). Returns (B, T, d_out)."""
    B, T, d_in = x.shape
    d_out = wq.shape[1]
    assert d_out % num_heads == 0, "d_out must be divisible by num_heads"
    head_dim = d_out // num_heads
    scale = 1.0 / (head_dim ** 0.5)
    dtype = x.dtype

    # Sequence tile (sublane-aligned). Zero-padding T is safe under causal
    # masking: padded keys are always masked for real queries, and padded
    # query rows are sliced off at the end.
    t = min(block_t, _round_up(T, 8))
    T_pad = _round_up(T, t)
    if T_pad != T:
        x = jnp.pad(x, ((0, 0), (0, T_pad - T), (0, 0)))
    n_t = T_pad // t

    def _params(sem):
        kw = dict(dimension_semantics=sem)
        if vmem_limit_bytes is not None:          # raise on v5e (16 MiB default)
            kw["vmem_limit_bytes"] = vmem_limit_bytes
        return pltpu.CompilerParams(**kw)

    # ---- kernel 1: QKV projections (scale folded into Q) ----
    qkv_shape = jax.ShapeDtypeStruct((B, T_pad, d_out), dtype)
    w_spec = pl.BlockSpec((d_in, d_out), lambda b, i: (0, 0))
    q, k, v = pl.pallas_call(
        functools.partial(_qkv_proj_kernel, scale=scale),
        out_shape=(qkv_shape, qkv_shape, qkv_shape),
        grid_spec=pltpu.PrefetchScalarGridSpec(
            num_scalar_prefetch=0,
            grid=(B, n_t),
            in_specs=[
                pl.BlockSpec((1, t, d_in), lambda b, i: (b, i, 0)),   # x tile
                w_spec, w_spec, w_spec,                               # W_q, W_k, W_v
            ],
            out_specs=[pl.BlockSpec((1, t, d_out), lambda b, i: (b, i, 0))] * 3,
        ),
        compiler_params=_params(("parallel", "parallel")),
    )(x, wq, wk, wv)

    # ---- kernel 2: flash attention + fused output projection ----
    bo2 = bo.reshape(1, d_out)
    out = pl.pallas_call(
        functools.partial(_flash_attn_kernel, num_heads=num_heads,
                          head_dim=head_dim),
        out_shape=jax.ShapeDtypeStruct((B, T_pad, d_out), dtype),
        grid_spec=pltpu.PrefetchScalarGridSpec(
            num_scalar_prefetch=0,
            grid=(B, n_t, n_t),                   # (batch, q tiles, kv tiles)
            in_specs=[
                pl.BlockSpec((1, t, d_out), lambda b, qi, ki: (b, qi, 0)),  # Q
                pl.BlockSpec((1, t, d_out), lambda b, qi, ki: (b, ki, 0)),  # K
                pl.BlockSpec((1, t, d_out), lambda b, qi, ki: (b, ki, 0)),  # V
                pl.BlockSpec((d_out, d_out), lambda b, qi, ki: (0, 0)),     # W_o
                pl.BlockSpec((1, d_out), lambda b, qi, ki: (0, 0)),         # b_o
            ],
            out_specs=pl.BlockSpec((1, t, d_out), lambda b, qi, ki: (b, qi, 0)),
            scratch_shapes=[
                pltpu.VMEM((num_heads, t, 1), jnp.float32),          # running max
                pltpu.VMEM((num_heads, t, 1), jnp.float32),          # running sum
                pltpu.VMEM((num_heads, t, head_dim), jnp.float32),   # ctx accumulator
            ],
        ),
        compiler_params=_params(("parallel", "parallel", "arbitrary")),
    )(q, k, v, wo, bo2)

    if T_pad != T:
        out = out[:, :T, :]
    return out


def _reference(x, wq, wk, wv, wo, bo, num_heads):
    """Pure-JAX reference mirroring the PyTorch forward (eval mode)."""
    B, T, d_in = x.shape
    d_out = wq.shape[1]
    head_dim = d_out // num_heads
    q = (x @ wq).reshape(B, T, num_heads, head_dim).transpose(0, 2, 1, 3)
    k = (x @ wk).reshape(B, T, num_heads, head_dim).transpose(0, 2, 1, 3)
    v = (x @ wv).reshape(B, T, num_heads, head_dim).transpose(0, 2, 1, 3)
    scores = jnp.einsum('bhid,bhjd->bhij', q, k)
    mask = jnp.triu(jnp.ones((T, T), bool), k=1)
    scores = jnp.where(mask, -jnp.inf, scores)
    attn = jax.nn.softmax(scores / head_dim ** 0.5, axis=-1)
    ctx = jnp.einsum('bhij,bhjd->bhid', attn, v).transpose(0, 2, 1, 3).reshape(B, T, d_out)
    return ctx @ wo + bo


if __name__ == "__main__":
    # small, module-consistent shapes
    B, T, d_in, d_out, num_heads = 2, 8, 32, 32, 4
    context_length = T
    dropout = 0.0  # eval-mode forward

    key = jax.random.PRNGKey(0)
    kx, k1, k2, k3, k4, k5 = jax.random.split(key, 6)

    x = jax.random.normal(kx, (B, T, d_in), dtype=jnp.float32)
    # deterministic parameter init (nn.Linear-style uniform bound)
    bound_in = 1.0 / (d_in ** 0.5)
    bound_out = 1.0 / (d_out ** 0.5)
    wq = jax.random.uniform(k1, (d_in, d_out), jnp.float32, -bound_in, bound_in)
    wk = jax.random.uniform(k2, (d_in, d_out), jnp.float32, -bound_in, bound_in)
    wv = jax.random.uniform(k3, (d_in, d_out), jnp.float32, -bound_in, bound_in)
    wo = jax.random.uniform(k4, (d_out, d_out), jnp.float32, -bound_out, bound_out)
    bo = jax.random.uniform(k5, (d_out,), jnp.float32, -bound_out, bound_out)

    out = multi_head_attention(x, wq, wk, wv, wo, bo, num_heads=num_heads)
    out = jax.block_until_ready(out)

    ref = _reference(x, wq, wk, wv, wo, bo, num_heads)
    assert out.shape == (B, T, d_out)
    assert jnp.allclose(out, ref, atol=1e-4, rtol=1e-4), "mismatch vs reference"

    print("KERNEL_OK")
</pallas_src>

<mosaic_0001>
module attributes {stable_mosaic.version = 11 : i64} {
  func.func @_qkv_proj_kernel(%arg0: i32, %arg1: i32, %arg2: memref<1x8x32xf32, #tpu.memory_space<vmem>>, %arg3: memref<32x32xf32, #tpu.memory_space<vmem>>, %arg4: memref<32x32xf32, #tpu.memory_space<vmem>>, %arg5: memref<32x32xf32, #tpu.memory_space<vmem>>, %arg6: memref<1x8x32xf32, #tpu.memory_space<vmem>>, %arg7: memref<1x8x32xf32, #tpu.memory_space<vmem>>, %arg8: memref<1x8x32xf32, #tpu.memory_space<vmem>>) attributes {dimension_semantics = [#tpu.dimension_semantics<parallel>, #tpu.dimension_semantics<parallel>], iteration_bounds = array<i64: 2, 1>, scalar_prefetch = 0 : i64, scratch_operands = 0 : i64, tpu.core_type = #tpu.core_type<tc>, window_params = [{transform_indices = @transform_0, window_bounds = array<i64: 1, 8, 32>}, {pipeline_mode = #tpu.pipeline_mode<synchronous>, transform_indices = @transform_1, window_bounds = array<i64: 32, 32>}, {pipeline_mode = #tpu.pipeline_mode<synchronous>, transform_indices = @transform_2, window_bounds = array<i64: 32, 32>}, {pipeline_mode = #tpu.pipeline_mode<synchronous>, transform_indices = @transform_3, window_bounds = array<i64: 32, 32>}, {transform_indices = @transform_4, window_bounds = array<i64: 1, 8, 32>}, {transform_indices = @transform_5, window_bounds = array<i64: 1, 8, 32>}, {transform_indices = @transform_6, window_bounds = array<i64: 1, 8, 32>}]} {
    %c0 = arith.constant 0 : index
    %c0_0 = arith.constant 0 : index
    %c0_1 = arith.constant 0 : index
    %0 = vector.load %arg2[%c0, %c0_0, %c0_1] : memref<1x8x32xf32, #tpu.memory_space<vmem>>, vector<1x8x32xf32>
    %1 = vector.shape_cast %0 : vector<1x8x32xf32> to vector<8x32xf32>
    %c0_2 = arith.constant 0 : index
    %c0_3 = arith.constant 0 : index
    %2 = vector.load %arg3[%c0_2, %c0_3] : memref<32x32xf32, #tpu.memory_space<vmem>>, vector<32x32xf32>
    %cst = arith.constant dense<0.000000e+00> : vector<8x32xf32>
    %3 = tpu.matmul %1, %2, %cst {dimension_numbers = #tpu.dot_dimension_numbers<[1], [0], [0], [1], [0, 0, 1, 1], [], []>} : vector<8x32xf32>, vector<32x32xf32>, vector<8x32xf32> -> vector<8x32xf32>
    %cst_4 = arith.constant 0.353553385 : f32
    %4 = vector.broadcast %cst_4 : f32 to vector<8x32xf32>
    %5 = arith.mulf %3, %4 : vector<8x32xf32>
    %c0_5 = arith.constant 0 : index
    %c0_6 = arith.constant 0 : index
    %6 = vector.load %arg4[%c0_5, %c0_6] : memref<32x32xf32, #tpu.memory_space<vmem>>, vector<32x32xf32>
    %cst_7 = arith.constant dense<0.000000e+00> : vector<8x32xf32>
    %7 = tpu.matmul %1, %6, %cst_7 {dimension_numbers = #tpu.dot_dimension_numbers<[1], [0], [0], [1], [0, 0, 1, 1], [], []>} : vector<8x32xf32>, vector<32x32xf32>, vector<8x32xf32> -> vector<8x32xf32>
    %c0_8 = arith.constant 0 : index
    %c0_9 = arith.constant 0 : index
    %8 = vector.load %arg5[%c0_8, %c0_9] : memref<32x32xf32, #tpu.memory_space<vmem>>, vector<32x32xf32>
    %cst_10 = arith.constant dense<0.000000e+00> : vector<8x32xf32>
    %9 = tpu.matmul %1, %8, %cst_10 {dimension_numbers = #tpu.dot_dimension_numbers<[1], [0], [0], [1], [0, 0, 1, 1], [], []>} : vector<8x32xf32>, vector<32x32xf32>, vector<8x32xf32> -> vector<8x32xf32>
    %c0_11 = arith.constant 0 : index
    %c0_12 = arith.constant 0 : index
    %c0_13 = arith.constant 0 : index
    %10 = vector.load %arg6[%c0_11, %c0_12, %c0_13] : memref<1x8x32xf32, #tpu.memory_space<vmem>>, vector<1x8x32xf32>
    %11 = vector.shape_cast %10 : vector<1x8x32xf32> to vector<8x32xf32>
    %12 = vector.shape_cast %5 : vector<8x32xf32> to vector<1x8x32xf32>
    tpu.vector_store %arg6[%c0_11, %c0_12, %c0_13], %12 {strides = array<i32>} : memref<1x8x32xf32, #tpu.memory_space<vmem>>, vector<1x8x32xf32>,
    %c0_14 = arith.constant 0 : index
    %c0_15 = arith.constant 0 : index
    %c0_16 = arith.constant 0 : index
    %13 = vector.load %arg7[%c0_14, %c0_15, %c0_16] : memref<1x8x32xf32, #tpu.memory_space<vmem>>, vector<1x8x32xf32>
    %14 = vector.shape_cast %13 : vector<1x8x32xf32> to vector<8x32xf32>
    %15 = vector.shape_cast %7 : vector<8x32xf32> to vector<1x8x32xf32>
    tpu.vector_store %arg7[%c0_14, %c0_15, %c0_16], %15 {strides = array<i32>} : memref<1x8x32xf32, #tpu.memory_space<vmem>>, vector<1x8x32xf32>,
    %c0_17 = arith.constant 0 : index
    %c0_18 = arith.constant 0 : index
    %c0_19 = arith.constant 0 : index
    %16 = vector.load %arg8[%c0_17, %c0_18, %c0_19] : memref<1x8x32xf32, #tpu.memory_space<vmem>>, vector<1x8x32xf32>
    %17 = vector.shape_cast %16 : vector<1x8x32xf32> to vector<8x32xf32>
    %18 = vector.shape_cast %9 : vector<8x32xf32> to vector<1x8x32xf32>
    tpu.vector_store %arg8[%c0_17, %c0_18, %c0_19], %18 {strides = array<i32>} : memref<1x8x32xf32, #tpu.memory_space<vmem>>, vector<1x8x32xf32>,
    return
  }
  func.func @transform_0(%arg0: i32, %arg1: i32) -> (i32, i32, i32) {
    %c0_i32 = arith.constant 0 : i32
    %c0_i32_0 = arith.constant 0 : i32
    return %arg0, %arg1, %c0_i32 : i32, i32, i32
  }
  func.func @transform_1(%arg0: i32, %arg1: i32) -> (i32, i32) {
    %c0_i32 = arith.constant 0 : i32
    %c0_i32_0 = arith.constant 0 : i32
    %c0_i32_1 = arith.constant 0 : i32
    return %c0_i32, %c0_i32_0 : i32, i32
  }
  func.func @transform_2(%arg0: i32, %arg1: i32) -> (i32, i32) {
    %c0_i32 = arith.constant 0 : i32
    %c0_i32_0 = arith.constant 0 : i32
    %c0_i32_1 = arith.constant 0 : i32
    return %c0_i32, %c0_i32_0 : i32, i32
  }
  func.func @transform_3(%arg0: i32, %arg1: i32) -> (i32, i32) {
    %c0_i32 = arith.constant 0 : i32
    %c0_i32_0 = arith.constant 0 : i32
    %c0_i32_1 = arith.constant 0 : i32
    return %c0_i32, %c0_i32_0 : i32, i32
  }
  func.func @transform_4(%arg0: i32, %arg1: i32) -> (i32, i32, i32) {
    %c0_i32 = arith.constant 0 : i32
    %c0_i32_0 = arith.constant 0 : i32
    return %arg0, %arg1, %c0_i32 : i32, i32, i32
  }
  func.func @transform_5(%arg0: i32, %arg1: i32) -> (i32, i32, i32) {
    %c0_i32 = arith.constant 0 : i32
    %c0_i32_0 = arith.constant 0 : i32
    return %arg0, %arg1, %c0_i32 : i32, i32, i32
  }
  func.func @transform_6(%arg0: i32, %arg1: i32) -> (i32, i32, i32) {
    %c0_i32 = arith.constant 0 : i32
    %c0_i32_0 = arith.constant 0 : i32
    return %arg0, %arg1, %c0_i32 : i32, i32, i32
  }
}

</mosaic_0001>

<bundles_post_ra>
// kernel: tpu_custom_call.1
= control target key start
LH: loop header
LB: loop body
LE: loop exit
PB: predicated region body
PF: predicated region fallthrough
CT: control target
= control target key end

     0   :  { %s1363_s0 = inlined_call_operand.hbm [shape: f32[2,8,32], index: 0, kind: input, shape index: {}]   ;;  %s1364_s1 = inlined_call_operand.hbm [shape: f32[32,32], index: 1, kind: input, shape index: {}]   ;;  %s1365_s2 = inlined_call_operand.hbm [shape: f32[32,32], index: 2, kind: input, shape index: {}]   ;;  %s1366_s3 = inlined_call_operand.hbm [shape: f32[32,32], index: 3, kind: input, shape index: {}]   ;;  %s1367_s4 = inlined_call_operand.hbm [shape: f32[2,8,32], index: 4, kind: output, shape index: {0}]   ;;  %s1368_s5 = inlined_call_operand.hbm [shape: f32[2,8,32], index: 5, kind: output, shape index: {1}]   ;;  %s1369_s6 = inlined_call_operand.hbm [shape: f32[2,8,32], index: 6, kind: output, shape index: {2}]  }
   0x1   :  { %1373 = sst [smem:[#allocation20_spill]] %s1363_s0 }
   0x2   :  { %1374 = sst [smem:[#allocation21_spill]] %s1364_s1 }
   0x3   :  { %1375 = sst [smem:[#allocation22_spill]] %s1365_s2 }
   0x4   :  { %12 = vsyncpa [#allocation3], 0 }
   0x5   :  { %14 = vsyncpa [#allocation3 + $0x1], 0 }
   0x6   :  { %15 = vsyncpa [#allocation6], 0 }
   0x7   :  { %16 = vsyncpa [#allocation9], 0 }
   0x8   :  { %17 = vsyncpa [#allocation4], 0 }
   0x9   :  { %19 = vsyncpa [#allocation4 + $0x1], 0 }
   0xa   :  { %20 = vsyncpa [#allocation12], 0 }
   0xb   :  { %22 = vsyncpa [#allocation12 + $0x1], 0  ;;  %s1115_s21 = smov 0   ;;  %s1117_s22 = smov 0  }
   0xc   :  { %s1119_s23 = smov 0   ;;  %s1121_s24 = smov 0  }
   0xd   :  { %s1123_s25 = smov 0   ;;  %s1125_s26 = smov 0  }
   0xe LB: > { %s1146_s27 = sadd.s32 4294967295, %s1073_s26   ;;  %p672_p0 = scmp.ge.s32.totalorder %s1073_s26, 1  ;;  %s1073_s26 = sphi %s1125_s26, %s28_s26   ;;  %s1069_s25 = sphi %s1123_s25, %s1394_s25   ;;  %s1065_s24 = sphi %s1121_s24, %s1393_s24   ;;  %s1061_s23 = sphi %s1119_s23, %s1392_s23   ;;  %s1057_s22 = sphi %s1117_s22, %s1391_s22   ;;  %s1053_s21 = sphi %s1115_s21, %s1390_s21  }
   0xf   : > { %p63_p1 = scmp.eq.s32.totalorder %s1146_s27, 0  ;;  %p220_p2 = scmp.lt.s32.totalorder %s1073_s26, 3 }
  0x10   : > { %s1376_s1 = sld [smem:[#allocation21_spill]]  ;;  %s1075_s8 = smov [#allocation5]  }
  0x11   : > { %p1154_p3 = pnand %p672_p0, %p220_p2  ;;  %s233_s9 = sshll.u32 %s1075_s8, 4  ;;  %s234_s9 = int_to_ptr.vmem [resolvable:$true] %s233_s9 }
  0x12   : > { %p676_p6 = scmp.ge.s32.totalorder %s1073_s26, 2  ;;  %s1379_s2 = sld [smem:[#allocation22_spill]] }
  0x13   : > { %p718_p4 = pneg %p1154_p3  ;;  %s1076_s14 = smov 128  }
  0x14   : > { %s1077_s15 = smov 8   ;;  %s1078_s16 = smov [#allocation7]  }
  0x15   : > { %p1162_p5 = pnand %p718_p4, %p63_p1  ;;  %s247_s17 = sshll.u32 %s1078_s16, 4  ;;  %s248_s17 = int_to_ptr.vmem [resolvable:$true] %s247_s17 }
  0x16   : > { %s231_s30 = sshll.u32 %s1376_s1, 4  ;;  %s259_s20 = sshll.u32 %s1366_s3, 4  ;;  %s232_s30 = int_to_ptr.hbm [resolvable:$true] %s231_s30  ;;  %s260_s20 = int_to_ptr.hbm [resolvable:$true] %s259_s20 }
  0x17   : > { %721 = dma.hbm_to_vmem [thread:$0]  (!%p1162_p5), %s232_s30, 512, %s234_s9, [#allocation6], %s1076_s14, %s1076_s14, %s1077_s15  }
  0x18   : > { %s245_s13 = sshll.u32 %s1379_s2, 4  ;;  %s1079_s28 = smov [#allocation8]   ;;  %s246_s13 = int_to_ptr.hbm [resolvable:$true] %s245_s13 }
  0x19   : > { %724 = dma.hbm_to_vmem [thread:$0]  (!%p1162_p5), %s246_s13, 512, %s248_s17, [#allocation6], %s1076_s14, %s1076_s14, %s1077_s15  }
  0x1a   : > { %s261_s29 = sshll.u32 %s1079_s28, 4  ;;  %s1370_s30 = sadd.s32 4294967294, %s1073_s26   ;;  %s262_s29 = int_to_ptr.vmem [resolvable:$true] %s261_s29 }
  0x1b   : > { %727 = dma.hbm_to_vmem [thread:$0]  (!%p1162_p5), %s260_s20, 512, %s262_s29, [#allocation9], %s1076_s14, %s1076_s14, %s1077_s15  }
  0x1c   : > { %s40_s8 = sadd.s32 1, %s1069_s25  ;;  %s49_s9 = sadd.s32 1, %s1061_s23 }
  0x1d   : > { %p42_p7 = scmp.ge.s32.totalorder %s40_s8, 2  ;;  %p56_p8 = scmp.ne.s32.totalorder %s1061_s23, %s1057_s22 }
  0x1e   : > { %p57_p9 = scmp.eq.s32.totalorder %s1073_s26, 0  ;;  %p62_p10 = scmp.ne.s32.totalorder %s1057_s22, %s1053_s21 }
  0x1f   : > { %s1396_s8 = smov (%p42_p7, %s40_s8), 0  ;;  %p151_p13 = scmp.eq.s32.totalorder %s1146_s27, 1 }
  0x20   : > { %p1189_p11 = por %p57_p9, %p56_p8  ;;  %p1195_p12 = por %p63_p1, %p62_p10 }
  0x21   : > { %s44_s12 = ssub.s32 %s1069_s25, %s1396_s8  ;;  %p157_p2 = scmp.eq.s32.totalorder %s1370_s30, 1 }
  0x22   : > { %p47_p0 = scmp.eq.s32.totalorder %s44_s12, 0  ;;  %p1204_p4 = por %p151_p13, %p56_p8 }
  0x23   : > { %p745_p5 = scmp.lt.s32.totalorder %s1073_s26, 2  ;;  %p1212_p7 = por %p157_p2, %p62_p10 }
  0x24   : > { %s1210_s14 = scalar_select %p47_p0, %s1061_s23, %s49_s9  }
  0x25   : > { %s275_s16 = sand.u32 1, %s1061_s23   ;;  %s678_s18 = sshll.u32 %s1069_s25, 3 }
  0x26   : > { %s677_s17 = sshll.u32 %s275_s16, 3  ;;  %s1384_s0 = sld [smem:[#allocation20_spill]] }
  0x27   : > { %s279_s29 = scalar_lea.vmem [#allocation2], %s677_s17  ;;  %p729_p8 = pnand %p745_p5, %p1189_p11 }
  0x28   : > { %s288_s12 = sshll.u32 %s279_s29, 4  ;;  %s276_s9 = scalar_lea.sflag [#allocation3], %s275_s16  ;;  %s289_s12 = int_to_ptr.vmem [resolvable:$true] %s288_s12 }
  0x2a   : > { %297 = sbr.rel (%p1154_p3) target bundleno = 219 (0xdb), region = 36 }
  0x2c   : > { %s284_s28 = scalar_lea.hbm %s1384_s0, %s678_s18 }
  0x2d   : > { %s286_s30 = sshll.u32 %s284_s28, 4  ;;  %s287_s30 = int_to_ptr.hbm [resolvable:$true] %s286_s30 }
  0x2e   : > { %731 = dma.hbm_to_vmem [thread:$0]  (!%p729_p8), %s287_s30, 128, %s289_s12, %s276_s9  }
  0x2f   : > { %s1226_s1 = sand.u32 1, %s1057_s22  }
  0x30   : > { %s1229_s19 = sshll.u32 %s1226_s1, 3  ;;  %s300_s17 = scalar_lea.sflag [#allocation3], %s1226_s1 }
  0x31   : > { %s303_s18 = scalar_lea.vmem [#allocation2], %s1229_s19 }
  0x32   : > { %1032 = dma.done.wait (%p1195_p12), %s300_s17, 128  }
  0x33   : > { %1034 = vsyncadd (%p1195_p12), %s300_s17, 4294967168 }
  0x34   : > { %1036 = dma.done.wait (%p63_p1), [#allocation6], 1024  }
  0x35   : > { %1038 = vsyncadd (%p63_p1), [#allocation6], 4294966272 }
  0x36   : > { %1040 = dma.done.wait (%p63_p1), [#allocation9], 512  }
  0x37   : > { %1042 = vsyncadd (%p63_p1), [#allocation9], 4294966784  ;;  %v415_v0 = vld [vmem:[#allocation8 + $0x18] sm:$0xff]  ;;  %v414_v1 = vld [vmem:[#allocation8 + $0x10] sm:$0xff]  ;;  %vm363_vm0 = vcmask 261120   ;;  %s693_s7 = sshll.u32 %s1065_s24, 3 }
  0x38   : > { %v362_v2 = vld [vmem:[#allocation5 + $0x18] sm:$0xff]  ;;  %428 = vmatpush.msra.mxu2 %v415_v0  ;;  %v361_v4 = vld [vmem:[#allocation5 + $0x10] sm:$0xff]  ;;  %v413_v5 = vld [vmem:[#allocation8 + $0x8] sm:$0xff]  ;;  %s476_s10 = scalar_lea.hbm %s1368_s5, %s693_s7  ;;  %s444_s16 = sand.u32 1, %s1146_s27  }
  0x39   : > { %379 = vmatpush.msra.mxu0 %v362_v2  ;;  %v391_v3 = vld [vmem:[#allocation7 + $0x18] sm:$0xff]  ;;  %v390_v6 = vld [vmem:[#allocation7 + $0x10] sm:$0xff]  ;;  %v360_v7 = vld [vmem:[#allocation5 + $0x8] sm:$0xff]  ;;  %s350_s20 = scalar_lea.vmem [#allocation11], %s1229_s19  ;;  %s461_s9 = scalar_lea.hbm %s1367_s4, %s693_s7 }
  0x3a   : > { %404 = vmatpush.msra.mxu1 %v391_v3  ;;  %429 = vmatpush.msra.mxu2 %v414_v1  ;;  %v389_v8 = vld [vmem:[#allocation7 + $0x8] sm:$0xff]  ;;  %v412_v9 = vld [vmem:[#allocation8] sm:$0xff]  ;;  %v358_v11 = vld [vmem:[%s303_s18] sm:$0xff]  ;;  %s1254_s28 = sshll.u32 %s350_s20, 4  ;;  %s1371_s17 = scalar_lea.vmem [#allocation13], %s1229_s19  ;;  %s479_s28 = int_to_ptr.vmem [resolvable:$true] %s1254_s28 }
  0x3b   : > { %380 = vmatpush.msra.mxu0 %v361_v4  ;;  %v359_v10 = vld [vmem:[#allocation5] sm:$0xff]  ;;  %s1262_s18 = sshll.u32 %s1371_s17, 4  ;;  %s491_s24 = scalar_lea.hbm %s1369_s6, %s693_s7  ;;  %s494_s18 = int_to_ptr.vmem [resolvable:$true] %s1262_s18 }
  0x3c   : > { %405 = vmatpush.msra.mxu1 %v390_v6  ;;  %430 = vmatpush.msra.mxu2 %v413_v5  ;;  %v388_v12 = vld [vmem:[#allocation7] sm:$0xff]  ;;  %s1267_s30 = sshll.u32 %s476_s10, 4  ;;  %s343_s27 = scalar_lea.vmem [#allocation10], %s1229_s19  ;;  %s481_s30 = int_to_ptr.hbm [resolvable:$true] %s1267_s30 }
  0x3d   : > { %381 = vmatpush.msra.mxu0 %v360_v7  ;;  %s1272_s11 = sshll.u32 %s343_s27, 4  ;;  %s1274_s29 = sshll.u32 %s461_s9, 4  ;;  %s466_s29 = int_to_ptr.hbm [resolvable:$true] %s1274_s29 }
  0x3e   : > { %406 = vmatpush.msra.mxu1 %v389_v8  ;;  %431 = vmatpush.msra.mxu2 %v412_v9  ;;  %1385 = sst [smem:[#allocation19_spill]] %s1272_s11  ;;  %s1277_s12 = sshll.u32 %s491_s24, 4  ;;  %s496_s12 = int_to_ptr.hbm [resolvable:$true] %s1277_s12 }
  0x3f   : > { %382 = vmatpush.msra.mxu0 %v359_v10  ;;  %689 = vmatmul.msk.f32.vlgmr.msra.gmra.mxu2 %vm363_vm0, %v358_v11  ;;  %s1285_s0 = scalar_lea.sflag [#allocation12], %s444_s16  ;;  %s937_s2 = sshra.s32 %s481_s30, 4  ;;  %s938_s2 = int_to_ptr.hbm [resolvable:$true] %s937_s2 }
  0x40   : > { %687 = vmatmul.msk.f32.vlgmr.msra.gmra.mxu0 %vm363_vm0, %v358_v11  ;;  %407 = vmatpush.msra.mxu1 %v388_v12  ;;  %s939_s7 = scalar_lea.hbm %s938_s2, 8  ;;  %s943_s24 = scalar_lea.hbm %s1368_s5, 16 }
  0x41   : > { %688 = vmatmul.msk.f32.vlgmr.msra.gmra.mxu1 %vm363_vm0, %v358_v11  ;;  %p940_p1 = scmp.ne.s32.totalorder %s938_s2, %s939_s7  ;;  %p944_p10 = scmp.lt.s32.totalorder %s938_s2, %s1368_s5 }
  0x42   : > { %p945_p11 = scmp.lt.s32.totalorder %s943_s24, %s939_s7 }
  0x43   : > { %p941_p3 = pnand %p940_p1, %p1204_p4 }
  0x44   : > { %p946_p12 = por %p945_p11, %p944_p10 }
  0x45   : > { %p942_p9 = pneg %p941_p3 }
  0x47   : > { %p947_p13 = pnand %p946_p12, %p942_p9 }
  0xbd   : > { %v384_v13 = vpop.f32.mrf.mxu0 }
  0xbe   : > { %v387_v14 = vmul.f32 0.35355338, %v384_v13  ;;  %v409_v15 = vpop.f32.mrf.mxu1 }
  0xbf   : > { %437 = vst.msk [vmem:[%s350_s20] sm:$0xff] %vm363_vm0, %v409_v15 }
  0xc0   : > { %950 = shalt.err (!%p947_p13)
}
  0xc1   : > { %713 = dma.vmem_to_hbm [thread:$0]  (%p1204_p4), %s479_s28, 128, %s481_s30, %s1285_s0   ;;  %436 = vst.msk [vmem:[%s343_s27] sm:$0xff] %vm363_vm0, %v387_v14 }
  0xc2   : > { %s440_s16 = scalar_lea.sflag [#allocation4], %s1226_s1  ;;  %s965_s20 = sshra.s32 %s466_s29, 4  ;;  %s966_s20 = int_to_ptr.hbm [resolvable:$true] %s965_s20 }
  0xc3   : > { %s967_s17 = scalar_lea.hbm %s966_s20, 8  ;;  %s971_s7 = scalar_lea.hbm %s1367_s4, 16 }
  0xc4   : > { %p968_p0 = scmp.ne.s32.totalorder %s966_s20, %s967_s17  ;;  %p972_p8 = scmp.lt.s32.totalorder %s966_s20, %s1367_s4 }
  0xc5   : > { %p973_p1 = scmp.lt.s32.totalorder %s971_s7, %s967_s17 }
  0xc6   : > { %p969_p2 = pnand %p968_p0, %p1204_p4 }
  0xc7   : > { %p974_p3 = por %p973_p1, %p972_p8 }
  0xc8   : > { %p970_p5 = pneg %p969_p2 }
  0xca   : > { %p975_p9 = pnand %p974_p3, %p970_p5 }
  0xcc   : > { %978 = shalt.err (!%p975_p9)
}
  0xcd   : > { %s1386_s1 = sld [smem:[#allocation19_spill]]  ;;  %v433_v16 = vpop.f32.mrf.mxu2  ;;  %s1388_s30 = scalar_lea.vmem [#allocation13], %s1229_s19 }
  0xce   : > { %438 = vst.msk [vmem:[%s1388_s30] sm:$0xff] %vm363_vm0, %v433_v16  ;;  %s993_s27 = sshra.s32 %s496_s12, 4  ;;  %s999_s11 = scalar_lea.hbm %s1369_s6, 16  ;;  %s994_s27 = int_to_ptr.hbm [resolvable:$true] %s993_s27 }
  0xcf   : > { %s995_s24 = scalar_lea.hbm %s994_s27, 8  ;;  %p1000_p13 = scmp.lt.s32.totalorder %s994_s27, %s1369_s6 }
  0xd0   : > { %p996_p10 = scmp.ne.s32.totalorder %s994_s27, %s995_s24  ;;  %p1001_p0 = scmp.lt.s32.totalorder %s999_s11, %s995_s24 }
  0xd2   : > { %p997_p11 = pnand %p996_p10, %p1204_p4  ;;  %p1002_p2 = por %p1001_p0, %p1000_p13 }
  0xd3   : > { %s1387_s28 = int_to_ptr.vmem [resolvable:$true] %s1386_s1 }
  0xd4   : > { %712 = dma.vmem_to_hbm [thread:$0]  (%p1204_p4), %s1387_s28, 128, %s466_s29, %s440_s16  }
  0xd5   : > { %p998_p12 = pneg %p997_p11 }
  0xd7   : > { %p1003_p5 = pnand %p1002_p2, %p998_p12 }
  0xd9   : > { %1006 = shalt.err (!%p1003_p5)
}
  0xda   : > { %714 = dma.vmem_to_hbm [thread:$0]  (%p1204_p4), %s494_s18, 128, %s496_s12, %s1285_s0  }
  0xdb PF: > { %s507_s19 = sand.u32 1, %s1053_s21   ;;  %p733_p8 = pnand %p676_p6, %p1212_p7 }
  0xdc   : > { %s508_s29 = scalar_lea.sflag [#allocation4], %s507_s19 }
  0xdd   : > { %p734_p1 = pneg %p733_p8 }
  0xdf   : > { %1044 = dma.done.wait (%p734_p1), %s508_s29, 128  }
  0xe0   : > { %1046 = vsyncadd (%p734_p1), %s508_s29, 4294967168  ;;  %s1389_s13 = sadd.s32 4294967294, %s1073_s26  }
  0xe1   : > { %s517_s16 = sand.u32 1, %s1389_s13  }
  0xe2   : > { %s518_s10 = scalar_lea.sflag [#allocation12], %s517_s16 }
  0xe3   : > { %1048 = dma.done.wait (%p734_p1), %s518_s10, 256  }
  0xe4   : > { %1050 = vsyncadd (%p734_p1), %s518_s10, 4294967040  ;;  %s28_s26 = sadd.s32 1, %s1073_s26   ;;  %s1390_s21 = smov %s1057_s22 }
  0xe5   : > { %p25_p4 = scmp.ge.s32.totalorder %s28_s26, 4   ;;  %s1391_s22 = smov %s1061_s23 }
  0xe6   : > { %s1392_s23 = smov %s1210_s14  ;;  %s1393_s24 = smov %s1069_s25 }
  0xe7   : > { %s1394_s25 = smov %s1396_s8  ;;  %27 = sbr.rel (!%p25_p4) target bundleno = 14 (0xe), region = 125 }
  0xec   :  { %534 = vsyncpa [#allocation3], 1 }
  0xed   :  { %536 = vsyncpa [#allocation3 + $0x1], 1 }
  0xee   :  { %537 = vsyncpa [#allocation6], 1 }
  0xef   :  { %538 = vsyncpa [#allocation9], 1 }
  0xf0   :  { %539 = vsyncpa [#allocation4], 1 }
  0xf1   :  { %541 = vsyncpa [#allocation4 + $0x1], 1 }
  0xf2   :  { %542 = vsyncpa [#allocation12], 1 }
  0xf3   :  { %544 = vsyncpa [#allocation12 + $0x1], 1 }

</bundles_post_ra>
